<compile_context>
chip_gen: v7x
topology: tpu7x:2x2x1
jax: 0.10.0
libtpu: 0.0.40
codegen_flags: <defaults>
</compile_context>

<pallas_src>
import math

import jax
import jax.numpy as jnp
from jax.experimental import pallas as pl
from jax.experimental.pallas import tpu as pltpu


_INV_SQRT2 = 1.0 / math.sqrt(2.0)


def _gelu_exact_f32(x):
    # F.gelu default (erf form), computed in f32. erf lowers to a VPU
    # polynomial chain (not the EUP) — see _gelu_tanh_f32 for the EUP path.
    return 0.5 * x * (1.0 + jax.lax.erf(x * _INV_SQRT2))


def _gelu_tanh_f32(x):
    # tanh-approx gelu; tanh goes to the EUP slot (cheaper on v5e).  Changes
    # numerics slightly vs exact gelu — gate on accuracy requirements.
    return jax.nn.gelu(x, approximate=True)


def _make_mlp_kernel(use_tanh_gelu):
    act = _gelu_tanh_f32 if use_tanh_gelu else _gelu_exact_f32

    def mlp_kernel(x_ref, w1_ref, b1_ref, w2_ref, o_ref, acc_ref):
        """One (token-tile, ffn-tile) step of the fused MLP.

        x_ref  : (tm, h)   token tile               (native dtype)
        w1_ref : (h, tf)   fc1 weight column-block  (native dtype)
        b1_ref : (1, ffn)  fc1 bias, fully resident (f32, cast in wrapper)
        w2_ref : (tf, h)   fc2 weight row-block     (native dtype)
        o_ref  : (tm, h)   output tile (resident across the ffn grid axis)
        acc_ref: (tm, h)   f32 accumulator scratch
        """
        k = pl.program_id(1)
        tf = w1_ref.shape[1]

        @pl.when(k == 0)
        def _():
            acc_ref[...] = jnp.zeros_like(acc_ref)

        # fc1 partial columns: native-dtype operands, f32 accumulation on MXU.
        h1 = jnp.dot(x_ref[...], w1_ref[...],
                     preferred_element_type=jnp.float32)

        # Bias window from the resident f32 bias (no per-step bias DMA).
        if b1_ref.shape[1] == tf:
            b1_blk = b1_ref[...]
        else:
            start = pl.multiple_of(k * tf, tf)
            b1_blk = b1_ref[:, pl.ds(start, tf)]

        h1 = act(h1 + b1_blk)

        # fc2 partial contraction over this ffn block; accumulate in f32.
        acc_ref[...] += jnp.dot(h1.astype(w2_ref.dtype), w2_ref[...],
                                preferred_element_type=jnp.float32)

        @pl.when(k == pl.num_programs(1) - 1)
        def _():
            o_ref[...] = acc_ref[...].astype(o_ref.dtype)

    return mlp_kernel


def _round_up(x, m):
    return ((x + m - 1) // m) * m


def _tpu_generation():
    """Best-effort TPU generation detection; falls back to a v7x-safe config."""
    try:
        kind = jax.devices()[0].device_kind.lower()
    except Exception:  # pragma: no cover
        return "unknown"
    if "v5" in kind:
        return "v5"
    if "v6" in kind:
        return "v6"
    if "v7" in kind or "tpu7" in kind:
        return "v7"
    return "unknown"


# Per-generation (tm_target, MXU granule, VMEM cap for this kernel).
_GEN_CFG = {
    "v5":      (256, 128, 100 << 20),   # 128 MiB physical VMEM
    "v6":      (1024, 256, 100 << 20),  # 128 MiB physical VMEM
    "v7":      (512, 256, 56 << 20),    # only 64 MiB physical VMEM
    "unknown": (512, 128, 56 << 20),    # conservative (v7x-safe) defaults
}


def _choose_tiles(T, h, ffn, x_bytes, w_bytes, out_bytes, gen):
    tm_target, granule, cap = _GEN_CFG[gen]
    budget = cap - (8 << 20)  # leave headroom for compiler-internal scratch

    # ---- token tile ---------------------------------------------------------
    if T <= 16:
        tm = _round_up(max(T, 1), 8)
    elif T <= granule:
        # Small T: at least 16-row tiles (bf16 sublane packing).
        tm = _round_up(T, 16)
    else:
        tm = min(tm_target, _round_up(T, granule))
        # Prefer a tm that divides T exactly: skips the wrapper-side jnp.pad
        # and out[:T] copies (each is an extra HBM pass over the activations).
        if T % tm != 0:
            for cand in range(tm, granule - 1, -granule):
                if T % cand == 0:
                    tm = cand
                    break

    if gen == "v7":
        # v7x has 2 TensorCores; the "parallel" token axis shards across them.
        # Make sure there are at least 2 token tiles so neither TC idles.
        # TODO(synk): also bias toward an *even* tile count for odd multi-tile T.
        while pl.cdiv(T, tm) < 2 and tm >= 2 * granule and tm % 2 == 0:
            tm //= 2

    # ---- ffn tile -----------------------------------------------------------
    tf = ffn
    for cand in (1024, 512, 256, 128):
        if ffn % cand == 0:
            tf = cand
            break

    # ---- VMEM-budget-driven shrink (keeps double-buffering alive) -----------
    def est(tm_, tf_):
        return (2 * tm_ * h * x_bytes        # x tile, double-buffered
                + 2 * tm_ * h * out_bytes    # out tile, double-buffered
                + tm_ * h * 4                # f32 accumulator scratch
                + 2 * h * tf_ * w_bytes      # W1 column-block, double-buffered
                + 2 * tf_ * h * w_bytes      # W2 row-block, double-buffered
                + tm_ * tf_ * 4              # f32 h1 intermediate
                + 8 * ffn * 4)               # resident bias (sublane-padded)

    while est(tm, tf) > budget:
        if tf > 512 and ffn % (tf // 2) == 0:
            tf //= 2
        elif tm > granule:
            tm = max(granule, tm // 2)
        elif tf >= 256 and ffn % (tf // 2) == 0:
            tf //= 2
        elif tm > 16:
            tm = max(16, tm // 2)
        else:
            break

    vmem_limit = int(min(cap, max(32 << 20, int(est(tm, tf) * 1.25))))
    return tm, tf, vmem_limit


def mlp_forward(hidden_states, w1, b1, w2, b2, *, tm=None, tf=None,
                use_tanh_gelu=False):
    """Runs the fused MLP Pallas kernel.

    hidden_states: [s, b, h]
    w1: [h, 4h], b1: [4h], w2: [4h, h], b2: [h]
    Returns (output [s, b, h], output_bias [h]) -- mirrors (output, output_bias)
    of the PyTorch module with skip_bias_add=True on fc2.
    """
    s, b, h = hidden_states.shape
    ffn = w1.shape[1]
    T = s * b

    gen = _tpu_generation()
    x_bytes = jnp.dtype(hidden_states.dtype).itemsize
    w_bytes = jnp.dtype(w1.dtype).itemsize
    auto_tm, auto_tf, vmem_limit = _choose_tiles(
        T, h, ffn, x_bytes, w_bytes, x_bytes, gen)
    if tm is None:
        tm = auto_tm
    if tf is None:
        tf = auto_tf
    assert ffn % tf == 0, "ffn tile must divide ffn_hidden_size"

    # Pad tokens up to a multiple of tm only when tm doesn't divide T.
    # (Padded rows compute gelu(b1) @ W2 garbage and are sliced off below.)
    Tp = pl.cdiv(T, tm) * tm
    xf = hidden_states.reshape(T, h)
    if Tp != T:
        xf = jnp.pad(xf, ((0, Tp - T), (0, 0)))

    # Hoist the bias cast out of the hot loop; bias stays VMEM-resident.
    b1_f32 = b1.astype(jnp.float32).reshape(1, ffn)

    grid = (Tp // tm, ffn // tf)

    out_flat = pl.pallas_call(
        _make_mlp_kernel(use_tanh_gelu),
        out_shape=jax.ShapeDtypeStruct((Tp, h), hidden_states.dtype),
        grid_spec=pltpu.PrefetchScalarGridSpec(
            num_scalar_prefetch=0,
            grid=grid,
            in_specs=[
                pl.BlockSpec((tm, h), lambda i, k: (i, 0)),    # x tile
                pl.BlockSpec((h, tf), lambda i, k: (0, k)),    # W1 column-block
                pl.BlockSpec((1, ffn), lambda i, k: (0, 0)),   # b1, resident
                pl.BlockSpec((tf, h), lambda i, k: (k, 0)),    # W2 row-block
            ],
            out_specs=pl.BlockSpec((tm, h), lambda i, k: (i, 0)),
            scratch_shapes=[pltpu.VMEM((tm, h), jnp.float32)],
        ),
        compiler_params=pltpu.CompilerParams(
            # token axis parallel (megacore shard on v7x), ffn reduction last.
            dimension_semantics=("parallel", "arbitrary"),
            vmem_limit_bytes=vmem_limit,
        ),
    )(xf, w1, b1_f32, w2)

    if Tp != T:
        out_flat = out_flat[:T]

    # TODO(synk): tensor-parallel p>1 would need a RowParallelLinear all-reduce
    # of the fc2 partial sums; p=1 is assumed here so none is emitted.
    return out_flat.reshape(s, b, h), b2


def _reference(hidden_states, w1, b1, w2, b2):
    x = hidden_states.astype(jnp.float32)
    hmid = x @ w1.astype(jnp.float32) + b1.astype(jnp.float32)
    hmid = _gelu_exact_f32(hmid)
    o = hmid @ w2.astype(jnp.float32)
    return o.astype(hidden_states.dtype), b2


if __name__ == "__main__":
    # Small shapes: s=8 (sequence), b=2 (batch), h=32 (hidden), ffn=4*h=128.
    s, b, h = 8, 2, 32
    ffn = 4 * h

    key = jax.random.PRNGKey(0)
    kx, kw1, kb1, kw2, kb2 = jax.random.split(key, 5)

    x = jax.random.normal(kx, (s, b, h), dtype=jnp.float32)
    # Deterministic "init_method"-style params (normal * 0.02), stored [in, out].
    w1 = 0.02 * jax.random.normal(kw1, (h, ffn), dtype=jnp.float32)
    b1 = 0.02 * jax.random.normal(kb1, (ffn,), dtype=jnp.float32)
    w2 = 0.02 * jax.random.normal(kw2, (ffn, h), dtype=jnp.float32)
    b2 = 0.02 * jax.random.normal(kb2, (h,), dtype=jnp.float32)

    out, out_bias = mlp_forward(x, w1, b1, w2, b2)
    out = jax.block_until_ready(out)
    out_bias = jax.block_until_ready(out_bias)

    ref_out, ref_bias = _reference(x, w1, b1, w2, b2)
    assert out.shape == (s, b, h)
    assert out_bias.shape == (h,)
    assert jnp.allclose(out, ref_out, atol=1e-4, rtol=1e-4)
    assert jnp.allclose(out_bias, ref_bias)

    print("KERNEL_OK")
</pallas_src>

<mosaic_0001>
module attributes {stable_mosaic.version = 11 : i64} {
  func.func @mlp_kernel(%arg0: i32, %arg1: i32, %arg2: memref<16x32xf32, #tpu.memory_space<vmem>>, %arg3: memref<32x128xf32, #tpu.memory_space<vmem>>, %arg4: memref<1x128xf32, #tpu.memory_space<vmem>>, %arg5: memref<128x32xf32, #tpu.memory_space<vmem>>, %arg6: memref<16x32xf32, #tpu.memory_space<vmem>>, %arg7: memref<16x32xf32, #tpu.memory_space<vmem>>) attributes {dimension_semantics = [#tpu.dimension_semantics<parallel>, #tpu.dimension_semantics<arbitrary>], iteration_bounds = array<i64: 1, 1>, scalar_prefetch = 0 : i64, scratch_operands = 1 : i64, tpu.core_type = #tpu.core_type<tc>, window_params = [{transform_indices = @transform_0, window_bounds = array<i64: 16, 32>}, {transform_indices = @transform_1, window_bounds = array<i64: 32, 128>}, {pipeline_mode = #tpu.pipeline_mode<synchronous>, transform_indices = @transform_2, window_bounds = array<i64: 1, 128>}, {transform_indices = @transform_3, window_bounds = array<i64: 128, 32>}, {transform_indices = @transform_4, window_bounds = array<i64: 16, 32>}]} {
    %c0_i32 = arith.constant 0 : i32
    %0 = arith.cmpi eq, %arg1, %c0_i32 : i32
    %1 = arith.extui %0 : i1 to i32
    %c0_i32_0 = arith.constant 0 : i32
    %2 = arith.cmpi ne, %1, %c0_i32_0 : i32
    scf.if %2 {
      %cst_18 = arith.constant 0.000000e+00 : f32
      %25 = vector.broadcast %cst_18 : f32 to vector<16x32xf32>
      %c0_19 = arith.constant 0 : index
      %c0_20 = arith.constant 0 : index
      %26 = vector.load %arg7[%c0_19, %c0_20] : memref<16x32xf32, #tpu.memory_space<vmem>>, vector<16x32xf32>
      tpu.vector_store %arg7[%c0_19, %c0_20], %25 {strides = array<i32>} : memref<16x32xf32, #tpu.memory_space<vmem>>, vector<16x32xf32>,
    } else {
    }
    %c0 = arith.constant 0 : index
    %c0_1 = arith.constant 0 : index
    %3 = vector.load %arg2[%c0, %c0_1] : memref<16x32xf32, #tpu.memory_space<vmem>>, vector<16x32xf32>
    %c0_2 = arith.constant 0 : index
    %c0_3 = arith.constant 0 : index
    %4 = vector.load %arg3[%c0_2, %c0_3] : memref<32x128xf32, #tpu.memory_space<vmem>>, vector<32x128xf32>
    %cst = arith.constant dense<0.000000e+00> : vector<16x128xf32>
    %5 = tpu.matmul %3, %4, %cst {dimension_numbers = #tpu.dot_dimension_numbers<[1], [0], [0], [1], [0, 0, 1, 1], [], []>} : vector<16x32xf32>, vector<32x128xf32>, vector<16x128xf32> -> vector<16x128xf32>
    %c0_4 = arith.constant 0 : index
    %c0_5 = arith.constant 0 : index
    %6 = vector.load %arg4[%c0_4, %c0_5] : memref<1x128xf32, #tpu.memory_space<vmem>>, vector<1x128xf32>
    %7 = vector.broadcast %6 : vector<1x128xf32> to vector<16x128xf32>
    %8 = arith.addf %5, %7 : vector<16x128xf32>
    %cst_6 = arith.constant 5.000000e-01 : f32
    %9 = vector.broadcast %cst_6 : f32 to vector<16x128xf32>
    %10 = arith.mulf %9, %8 : vector<16x128xf32>
    %cst_7 = arith.constant 0.707106769 : f32
    %11 = vector.broadcast %cst_7 : f32 to vector<16x128xf32>
    %12 = arith.mulf %8, %11 : vector<16x128xf32>
    %13 = math.erf %12 : vector<16x128xf32>
    %cst_8 = arith.constant 1.000000e+00 : f32
    %14 = vector.broadcast %cst_8 : f32 to vector<16x128xf32>
    %15 = arith.addf %14, %13 : vector<16x128xf32>
    %16 = arith.mulf %10, %15 : vector<16x128xf32>
    %c0_9 = arith.constant 0 : index
    %c0_10 = arith.constant 0 : index
    %17 = vector.load %arg7[%c0_9, %c0_10] : memref<16x32xf32, #tpu.memory_space<vmem>>, vector<16x32xf32>
    %c0_11 = arith.constant 0 : index
    %c0_12 = arith.constant 0 : index
    %18 = vector.load %arg5[%c0_11, %c0_12] : memref<128x32xf32, #tpu.memory_space<vmem>>, vector<128x32xf32>
    %cst_13 = arith.constant dense<0.000000e+00> : vector<16x32xf32>
    %19 = tpu.matmul %16, %18, %cst_13 {dimension_numbers = #tpu.dot_dimension_numbers<[1], [0], [0], [1], [0, 0, 1, 1], [], []>} : vector<16x128xf32>, vector<128x32xf32>, vector<16x32xf32> -> vector<16x32xf32>
    %20 = arith.addf %17, %19 : vector<16x32xf32>
    %c0_14 = arith.constant 0 : index
    %c0_15 = arith.constant 0 : index
    %21 = vector.load %arg7[%c0_14, %c0_15] : memref<16x32xf32, #tpu.memory_space<vmem>>, vector<16x32xf32>
    tpu.vector_store %arg7[%c0_14, %c0_15], %20 {strides = array<i32>} : memref<16x32xf32, #tpu.memory_space<vmem>>, vector<16x32xf32>,
    %c0_i32_16 = arith.constant 0 : i32
    %22 = arith.cmpi eq, %arg1, %c0_i32_16 : i32
    %23 = arith.extui %22 : i1 to i32
    %c0_i32_17 = arith.constant 0 : i32
    %24 = arith.cmpi ne, %23, %c0_i32_17 : i32
    scf.if %24 {
      %c0_18 = arith.constant 0 : index
      %c0_19 = arith.constant 0 : index
      %25 = vector.load %arg7[%c0_18, %c0_19] : memref<16x32xf32, #tpu.memory_space<vmem>>, vector<16x32xf32>
      %c0_20 = arith.constant 0 : index
      %c0_21 = arith.constant 0 : index
      %26 = vector.load %arg6[%c0_20, %c0_21] : memref<16x32xf32, #tpu.memory_space<vmem>>, vector<16x32xf32>
      tpu.vector_store %arg6[%c0_20, %c0_21], %25 {strides = array<i32>} : memref<16x32xf32, #tpu.memory_space<vmem>>, vector<16x32xf32>,
    } else {
    }
    return
  }
  func.func @transform_0(%arg0: i32, %arg1: i32) -> (i32, i32) {
    %c0_i32 = arith.constant 0 : i32
    %c0_i32_0 = arith.constant 0 : i32
    return %arg0, %c0_i32 : i32, i32
  }
  func.func @transform_1(%arg0: i32, %arg1: i32) -> (i32, i32) {
    %c0_i32 = arith.constant 0 : i32
    %c0_i32_0 = arith.constant 0 : i32
    return %c0_i32, %arg1 : i32, i32
  }
  func.func @transform_2(%arg0: i32, %arg1: i32) -> (i32, i32) {
    %c0_i32 = arith.constant 0 : i32
    %c0_i32_0 = arith.constant 0 : i32
    %c0_i32_1 = arith.constant 0 : i32
    return %c0_i32, %c0_i32_0 : i32, i32
  }
  func.func @transform_3(%arg0: i32, %arg1: i32) -> (i32, i32) {
    %c0_i32 = arith.constant 0 : i32
    %c0_i32_0 = arith.constant 0 : i32
    return %arg1, %c0_i32 : i32, i32
  }
  func.func @transform_4(%arg0: i32, %arg1: i32) -> (i32, i32) {
    %c0_i32 = arith.constant 0 : i32
    %c0_i32_0 = arith.constant 0 : i32
    return %arg0, %c0_i32 : i32, i32
  }
}

</mosaic_0001>

<bundles_post_ra>
// kernel: tpu_custom_call.1
= control target key start
LH: loop header
LB: loop body
LE: loop exit
PB: predicated region body
PF: predicated region fallthrough
CT: control target
= control target key end

     0   :  { %vm22_vm0 = vcmask 261120   ;;  %s513_s0 = inlined_call_operand.vmem [shape: f32[16,32], index: 0, kind: input, shape index: {}]   ;;  %s514_s1 = inlined_call_operand.vmem [shape: f32[32,128], index: 1, kind: input, shape index: {}]   ;;  %s515_s2 = inlined_call_operand.vmem [shape: f32[1,128], index: 2, kind: input, shape index: {}]   ;;  %s516_s3 = inlined_call_operand.vmem [shape: f32[128,32], index: 3, kind: input, shape index: {}]   ;;  %s517_s4 = inlined_call_operand.hbm [shape: f32[16,32], index: 4, kind: output, shape index: {}]  }
   0x1   :  { %v27_v0 = vld [vmem:[%s514_s1] sm:$0xff]  ;;  %v28_v1 = vld [vmem:[%s514_s1 + $0x8] sm:$0xff]  ;;  %v29_v2 = vld [vmem:[%s514_s1 + $0x10] sm:$0xff] }
   0x2   :  { %v323_v3 = vpack.c.bf16 %v28_v1, %v27_v0  ;;  %v30_v4 = vld [vmem:[%s514_s1 + $0x18] sm:$0xff]  ;;  %v25_v5 = vld [vmem:[%s513_s0] sm:$0xff]  ;;  %v133_v8 = vld [vmem:[%s516_s3 + $0x8] sm:$0xff] }
   0x3   :  { %v327_v6 = vpack.c.bf16 %v30_v4, %v29_v2  ;;  %285 = vmatprep.mubr.msk.f32.mxu0 %vm22_vm0, %v25_v5  ;;  %v132_v7 = vld [vmem:[%s516_s3] sm:$0xff]  ;;  %v134_v9 = vld [vmem:[%s516_s3 + $0x10] sm:$0xff]  ;;  %v135_v11 = vld [vmem:[%s516_s3 + $0x18] sm:$0xff] }
   0x4   :  { %324 = vmatprep.subr.bf16.mxu0 %v323_v3  ;;  %v331_v10 = vpack.c.bf16 %v133_v8, %v132_v7  ;;  %v335_v12 = vpack.c.bf16 %v135_v11, %v134_v9  ;;  %v136_v13 = vld [vmem:[%s516_s3 + $0x20] sm:$0xff]  ;;  %v137_v14 = vld [vmem:[%s516_s3 + $0x28] sm:$0xff] }
   0x5   :  { %326 = vmatpush3.bf16.msra.mxu0 %v323_v3 }
   0x6   :  { %9 = vsyncpa [#allocation4], 0  ;;  %328 = vmatprep.subr.bf16.mxu0 %v327_v6  ;;  %332 = vmatprep.subr.bf16.mxu1 %v331_v10  ;;  %v339_v15 = vpack.c.bf16 %v137_v14, %v136_v13  ;;  %v26_v16 = vld [vmem:[%s513_s0 + $0x8] sm:$0xff]  ;;  %v138_v17 = vld [vmem:[%s516_s3 + $0x30] sm:$0xff]  ;;  %v395_v32 = vmov 0.0  }
   0x7   :  { %334 = vmatpush3.bf16.msra.mxu1 %v331_v10  ;;  %v139_v18 = vld [vmem:[%s516_s3 + $0x38] sm:$0xff]  ;;  %v140_v20 = vld [vmem:[%s516_s3 + $0x40] sm:$0xff]  ;;  %v141_v21 = vld [vmem:[%s516_s3 + $0x48] sm:$0xff]  ;;  %24 = vst.msk [vmem:[#allocation2 + $0x8] sm:$0xff] %vm22_vm0, %v395_v32 }
   0x8   :  { %336 = vmatprep.subr.bf16.mxu1 %v335_v12  ;;  %v343_v19 = vpack.c.bf16 %v139_v18, %v138_v17  ;;  %v347_v22 = vpack.c.bf16 %v141_v21, %v140_v20  ;;  %v142_v23 = vld [vmem:[%s516_s3 + $0x50] sm:$0xff]  ;;  %v143_v24 = vld [vmem:[%s516_s3 + $0x58] sm:$0xff]  ;;  %v144_v26 = vld [vmem:[%s516_s3 + $0x60] sm:$0xff]  ;;  %23 = vst.msk [vmem:[#allocation2] sm:$0xff] %vm22_vm0, %v395_v32 }
   0x9   :  { %330 = vmatpush3.bf16.msra.mxu0 %v327_v6  ;;  %v351_v25 = vpack.c.bf16 %v143_v24, %v142_v23  ;;  %v145_v27 = vld [vmem:[%s516_s3 + $0x68] sm:$0xff]  ;;  %v146_v29 = vld [vmem:[%s516_s3 + $0x70] sm:$0xff]  ;;  %v147_v30 = vld [vmem:[%s516_s3 + $0x78] sm:$0xff] }
   0xa   :  { %v355_v28 = vpack.c.bf16 %v145_v27, %v144_v26  ;;  %v359_v31 = vpack.c.bf16 %v147_v30, %v146_v29  ;;  %v250_v33 = vld [vmem:[%s515_s2] ss:$0 sm:$0xff]  ;;  %s396_s2 = smov [#allocation3]  }
   0xb   :  { %338 = vmatpush3.bf16.msra.mxu1 %v335_v12  ;;  %s239_s3 = sshll.u32 %s396_s2, 4  ;;  %s240_s3 = int_to_ptr.vmem [resolvable:$true] %s239_s3 }
   0xc   :  { %286 = vmatmul.mubr.msk.f32.vlgmr.msra.gmra.mrb[0].mxu0 %vm22_vm0, %v26_v16  ;;  %340 = vmatprep.subr.bf16.mxu1 %v339_v15  ;;  %s371_s6 = scalar_lea.vmem %s240_s3, 256  ;;  %p376_p1 = scmp.lt.s32.totalorder %s240_s3, %s240_s3 }
   0xd   :  { %p372_p0 = scmp.ne.s32.totalorder %s240_s3, %s371_s6  ;;  %p377_p2 = scmp.lt.s32.totalorder %s371_s6, %s371_s6 }
   0xe   :  { %v131_v48 = vld [vmem:[#allocation2 + $0x8] sm:$0xff] }
   0xf   :  { %342 = vmatpush3.bf16.msra.mxu1 %v339_v15  ;;  %v130_v49 = vld [vmem:[#allocation2] sm:$0xff]  ;;  %p378_p3 = por %p377_p2, %p376_p1 }
  0x10   :  { %344 = vmatprep.subr.bf16.mxu1 %v343_v19 }
  0x11   :  { %p379_p4 = pnand %p378_p3, %p372_p0 }
  0x13   :  { %346 = vmatpush3.bf16.msra.mxu1 %v343_v19 }
  0x14   :  { %348 = vmatprep.subr.bf16.mxu1 %v347_v22 }
  0x17   :  { %350 = vmatpush3.bf16.msra.mxu1 %v347_v22 }
  0x18   :  { %352 = vmatprep.subr.bf16.mxu1 %v351_v25 }
  0x1b   :  { %354 = vmatpush3.bf16.msra.mxu1 %v351_v25 }
  0x1c   :  { %356 = vmatprep.subr.bf16.mxu1 %v355_v28 }
  0x1f   :  { %358 = vmatpush3.bf16.msra.mxu1 %v355_v28 }
  0x20   :  { %360 = vmatprep.subr.bf16.mxu1 %v359_v31 }
  0x23   :  { %362 = vmatpush3.bf16.msra.mxu1 %v359_v31 }
  0xdf   :  { %v287_v34 = vpop.f32.mrb[0].mxu0 }
  0xe0   :  { %v117_v35 = vadd.f32 %v287_v34, %v250_v33  ;;  %v111_v36 = vpop.f32.mrb[1].mxu0 }
  0xe1   :  { %v112_v37 = vadd.f32 %v250_v33, %v111_v36 }
  0xe2   :  { %v123_v38 = vmul.f32 0.70710677, %v117_v35  ;;  %v121_v45 = vmul.f32 0.5, %v117_v35 }
  0xe3   :  { %v122_v39 = vmul.f32 0.70710677, %v112_v37  ;;  %v120_v43 = vmul.f32 0.5, %v112_v37 }
  0xe4   :  { %367 = verf.f32 %v123_v38 }
  0xe5   :  { %369 = verf.f32 %v122_v39 }
  0xee   :  { %v368_v40 = vpop.eup %367 }
  0xef   :  { %v370_v41 = vpop.eup %369  ;;  %v127_v42 = vadd.f32 1.0, %v368_v40 }
  0xf0   :  { %v126_v44 = vadd.f32 1.0, %v370_v41 }
  0xf1   :  { %v129_v47 = vmul.f32 %v127_v42, %v121_v45 }
  0xf2   :  { %v128_v46 = vmul.f32 %v126_v44, %v120_v43 }
  0xf4   :  { %320 = vmatprep.mubr.f32.mxu1 %v128_v46 }
  0xf5   :  { %321 = vmatmul.mubr.f32.vlgmr.msra.gmra.mrb[0].mxu1 %v129_v47 }
 0x1c8   :  { %v322_v50 = vpop.f32.mrb[0].mxu1 }
 0x1c9   :  { %v224_v51 = vadd.f32 %v322_v50, %v131_v48  ;;  %v214_v52 = vpop.f32.mrb[1].mxu1 }
 0x1ca   :  { %v223_v53 = vadd.f32 %v214_v52, %v130_v49 }
 0x1cb   :  { %226 = vst.msk [vmem:[#allocation2 + $0x8] sm:$0xff] %vm22_vm0, %v224_v51 }
 0x1cc   :  { %225 = vst.msk [vmem:[#allocation2] sm:$0xff] %vm22_vm0, %v223_v53 }
 0x1d2   :  { %v231_v54 = vld [vmem:[#allocation2 + $0x8] sm:$0xff] }
 0x1d3   :  { %v230_v55 = vld [vmem:[#allocation2] sm:$0xff]  ;;  %233 = vst.msk [vmem:[#allocation3 + $0x8] sm:$0xff] %vm22_vm0, %v231_v54 }
 0x1d4   :  { %232 = vst.msk [vmem:[#allocation3] sm:$0xff] %vm22_vm0, %v230_v55 }
 0x1d5   :  { %382 = shalt.err (!%p379_p4)
}
 0x1d6   :  { %s383_s9 = scalar_lea.hbm %s517_s4, 256 }
 0x1d7   :  { %p384_p5 = scmp.ne.s32.totalorder %s517_s4, %s383_s9  ;;  %p387_p6 = scmp.lt.u32.totalorder %s383_s9, %s517_s4 }
 0x1d9   :  { %p389_p7 = pnand %p387_p6, %p384_p5 }
 0x1db   :  { %392 = shalt.err (!%p389_p7)
}
 0x1dc   :  { %s397_s14 = smov 128   ;;  %s398_s15 = smov 8  }
 0x1dd   :  { %245 = dma.vmem_to_hbm [thread:$0]  %s240_s3, 256, %s517_s4, [#allocation4], %s397_s14, %s397_s14, %s398_s15  }
 0x1de   :  { %393 = dma.done.wait [#allocation4], 256  }
 0x1df   :  { %394 = vsyncadd [#allocation4], 4294967040 }
 0x1e0   :  { %249 = vsyncpa [#allocation4], 1 }

</bundles_post_ra>
